<compile_context>
chip_gen: v7x
topology: tpu7x:2x2x1
jax: 0.10.0
libtpu: 0.0.40
codegen_flags: <defaults>
</compile_context>

<pallas_src>
import numpy as np
import jax
import jax.numpy as jnp
from jax import lax
from jax.experimental import pallas as pl
from jax.experimental.pallas import tpu as pltpu


def _cdiv(a, b):
    return -(-a // b)


def _plan_tiles(N, Cin, Cout, HW, x_bytes, out_bytes, budget_bytes, nb_cap=8):
    """Pick (nb images/step, spatial tile tl, n_t tiles, ragged?) under a VMEM budget.

    Budget is the double-buffered per-step footprint of the heavier pass 2:
      2 * nb * tl * (Cin*x_bytes + Cout*out_bytes).
    """
    per_lane = 2 * (Cin * x_bytes + Cout * out_bytes)  # bytes per lane per image (dbl-buffered)
    max_tl = max(budget_bytes // per_lane, 128)

    if HW <= max_tl:
        tl, n_t, ragged = HW, 1, False
        nb = 1
        # Grow the per-step batch when a single-image step would be small.
        for cand in range(min(N, nb_cap), 0, -1):
            if N % cand:
                continue
            if cand * tl * per_lane > budget_bytes:
                continue
            # Keep >=2 groups on the parallel axis (v7x megacore) unless a
            # single-image step is tiny anyway and overhead dominates.
            if N >= 2 and N // cand < 2 and tl * per_lane >= (2 << 20):
                continue
            nb = cand
            break
    else:
        nb = 1
        max_tl_128 = max((max_tl // 128) * 128, 128)
        n_t = _cdiv(HW, max_tl_128)
        tl = _cdiv(_cdiv(HW, n_t), 128) * 128      # roughly equal tiles, multiple of 128
        n_t = _cdiv(HW, tl)
        ragged = (HW % tl) != 0
    return nb, tl, n_t, ragged


def _make_stats_kernel(nb, tl, HW, ragged):
    """Accumulate sum(x) and Gram(x) = x @ x^T over spatial tiles into the output block."""

    def kernel(x_ref, xsum_ref, gram_ref):
        t = pl.program_id(1)

        @pl.when(t == 0)
        def _init():
            xsum_ref[...] = jnp.zeros_like(xsum_ref)
            gram_ref[...] = jnp.zeros_like(gram_ref)

        if ragged:
            lane = lax.broadcasted_iota(jnp.int32, (1, tl), 1)
            valid = (t * tl + lane) < HW           # mask OOB lanes of the last tile

        cin = x_ref.shape[1]
        xsum_part = jnp.zeros((cin, 1), jnp.float32)
        gram_part = jnp.zeros((cin, cin), jnp.float32)
        for i in range(nb):                         # small static unroll over images in block
            xi = x_ref[i].astype(jnp.float32)       # (Cin, tl), cast in-register
            if ragged:
                xi = jnp.where(valid, xi, 0.0)
            xsum_part = xsum_part + jnp.sum(xi, axis=1, keepdims=True)
            gram_part = gram_part + lax.dot_general(
                xi, xi, (((1,), (1,)), ((), ())),
                preferred_element_type=jnp.float32)  # (Cin, Cin), MXU contraction over lanes

        xsum_ref[...] += xsum_part[None]
        gram_ref[...] += gram_part[None]

    return kernel


def _make_conv_bn_relu_kernel(nb):
    """Folded conv + BN + ReLU: o = relu(W' @ x + b'), lane-dense NCHW output."""

    def kernel(x_ref, w_ref, b_ref, o_ref):
        w = w_ref[...]                               # (Cout, Cin)
        b = b_ref[...]                               # (Cout, 1)
        for i in range(nb):
            xi = x_ref[i].astype(jnp.float32)        # (Cin, tl)
            y = jnp.dot(w, xi, preferred_element_type=jnp.float32) + b
            o_ref[i] = jnp.maximum(y, 0.0).astype(o_ref.dtype)

    return kernel


def conv_block_forward(x_nchw, conv_w, conv_b, gamma, beta, eps=4e-5,
                       out_dtype=None, vmem_budget_bytes=16 << 20):
    N, Cin, H, W = x_nchw.shape
    Cout = conv_w.shape[0]
    HW = H * W
    M = N * HW
    f32 = jnp.float32
    out_dtype = x_nchw.dtype if out_dtype is None else out_dtype

    x_bytes = np.dtype(x_nchw.dtype).itemsize
    out_bytes = np.dtype(out_dtype).itemsize

    nb, tl, n_t, ragged = _plan_tiles(N, Cin, Cout, HW, x_bytes, out_bytes, vmem_budget_bytes)
    G = N // nb
    grid = (G, n_t)

    x3d = x_nchw.reshape(N, Cin, HW)                 # free reshape, stays NCHW, no dtype cast
    w2d = conv_w.reshape(Cout, Cin).astype(f32)
    b1d = conv_b.astype(f32)

    vmem_limit = 32 * 1024 * 1024                    # explicit scoped-VMEM cap (safe on v5e/v6e/v7x)

    # ------------- Pass 1: accumulate sum(x) and Gram(x) per image group -------------
    stats_cost = pl.CostEstimate(
        flops=M * (Cin + 2 * Cin * Cin),
        transcendentals=0,
        bytes_accessed=M * Cin * x_bytes + G * (Cin + Cin * Cin) * 4,
    )
    xsum_g, gram_g = pl.pallas_call(
        _make_stats_kernel(nb, tl, HW, ragged),
        out_shape=(jax.ShapeDtypeStruct((G, Cin, 1), f32),
                   jax.ShapeDtypeStruct((G, Cin, Cin), f32)),
        grid_spec=pltpu.PrefetchScalarGridSpec(
            num_scalar_prefetch=0,
            grid=grid,
            in_specs=[pl.BlockSpec((nb, Cin, tl), lambda g, t: (g, 0, t))],
            out_specs=(pl.BlockSpec((1, Cin, 1), lambda g, t: (g, 0, 0)),
                       pl.BlockSpec((1, Cin, Cin), lambda g, t: (g, 0, 0)))),
        compiler_params=pltpu.CompilerParams(
            dimension_semantics=("parallel", "arbitrary"),
            vmem_limit_bytes=vmem_limit),
        cost_estimate=stats_cost,
    )(x3d)

    # -------- Scalar glue (O(Cout + Cin^2)): reconstruct BN moments, fold into conv --------
    S = jnp.sum(xsum_g, axis=0)[:, 0]                # (Cin,)
    Gm = jnp.sum(gram_g, axis=0)                     # (Cin, Cin)
    wS = w2d @ S                                     # (Cout,)
    sum_y = wS + M * b1d
    sum_y2 = jnp.einsum('oc,cd,od->o', w2d, Gm, w2d) + 2.0 * b1d * wS + M * b1d * b1d
    mean = sum_y / M
    var = jnp.maximum(sum_y2 / M - mean * mean, 0.0)  # biased variance (BN train mode), clamp cancellation
    scale = gamma.astype(f32) / jnp.sqrt(var + eps)
    w_fold = w2d * scale[:, None]                                        # (Cout, Cin)
    b_fold = ((b1d - mean) * scale + beta.astype(f32)).reshape(Cout, 1)
    # TODO(synk): BatchNorm running_mean/running_var momentum(0.9997) buffer update
    # (training state) is not modeled; it does not affect the forward output.
    # TODO(synk): size-gated single-pass VMEM-resident variant (x DMA'd once, stats +
    # normalize without a second HBM read) would save ~25% traffic for small x.

    # ------ Pass 2: recompute cheap 1x1 conv with folded weights + ReLU ------
    out_cost = pl.CostEstimate(
        flops=M * (2 * Cin * Cout + 2 * Cout),
        transcendentals=0,
        bytes_accessed=M * Cin * x_bytes + M * Cout * out_bytes + (Cout * Cin + Cout) * 4,
    )
    out3d = pl.pallas_call(
        _make_conv_bn_relu_kernel(nb),
        out_shape=jax.ShapeDtypeStruct((N, Cout, HW), out_dtype),
        grid_spec=pltpu.PrefetchScalarGridSpec(
            num_scalar_prefetch=0,
            grid=grid,
            in_specs=[pl.BlockSpec((nb, Cin, tl), lambda g, t: (g, 0, t)),
                      pl.BlockSpec((Cout, Cin), lambda g, t: (0, 0)),
                      pl.BlockSpec((Cout, 1), lambda g, t: (0, 0))],
            out_specs=pl.BlockSpec((nb, Cout, tl), lambda g, t: (g, 0, t))),
        compiler_params=pltpu.CompilerParams(
            dimension_semantics=("parallel", "parallel"),
            vmem_limit_bytes=vmem_limit),
        cost_estimate=out_cost,
    )(x3d, w_fold, b_fold)

    return out3d.reshape(N, Cout, H, W)


def ref_forward(x, conv_w, conv_b, gamma, beta, eps=4e-5):
    # Pure-JAX reference mirroring the PyTorch forward (1x1 conv, train-mode BN, ReLU).
    Cout, Cin = conv_w.shape[0], conv_w.shape[1]
    y = jnp.einsum('nchw,oc->nohw', x, conv_w.reshape(Cout, Cin)) \
        + conv_b[None, :, None, None]
    mean = y.mean(axis=(0, 2, 3), keepdims=True)
    var = y.var(axis=(0, 2, 3), keepdims=True)       # biased variance
    yhat = (y - mean) / jnp.sqrt(var + eps)
    yhat = yhat * gamma[None, :, None, None] + beta[None, :, None, None]
    return jnp.maximum(yhat, 0.0)


if __name__ == "__main__":
    key = jax.random.PRNGKey(0)
    k_x, k_w, k_b, k_g, k_be = jax.random.split(key, 5)

    N, Cin, H, W = 2, 4, 16, 16
    Cout = 8

    x = jax.random.normal(k_x, (N, Cin, H, W), dtype=jnp.float32)
    # Conv2d(in=4, out=8, k=1): weight (8, 4, 1, 1), bias (8,)
    conv_w = 0.2 * jax.random.normal(k_w, (Cout, Cin, 1, 1), dtype=jnp.float32)
    conv_b = 0.1 * jax.random.normal(k_b, (Cout,), dtype=jnp.float32)
    # BatchNorm2d(8): weight (gamma), bias (beta)
    gamma = 1.0 + 0.1 * jax.random.normal(k_g, (Cout,), dtype=jnp.float32)
    beta = 0.1 * jax.random.normal(k_be, (Cout,), dtype=jnp.float32)

    out = conv_block_forward(x, conv_w, conv_b, gamma, beta)
    out = jax.block_until_ready(out)

    ref = ref_forward(x, conv_w, conv_b, gamma, beta)
    assert out.shape == (N, Cout, H, W)
    assert jnp.allclose(out, ref, atol=1e-4, rtol=1e-4), \
        f"max abs err {jnp.max(jnp.abs(out - ref))}"

    print("KERNEL_OK")
</pallas_src>

<mosaic_0001>
module attributes {stable_mosaic.version = 11 : i64} {
  func.func @kernel(%arg0: i32, %arg1: i32, %arg2: memref<2x4x256xf32, #tpu.memory_space<vmem>>, %arg3: memref<1x4x1xf32, #tpu.memory_space<vmem>>, %arg4: memref<1x4x4xf32, #tpu.memory_space<vmem>>) attributes {dimension_semantics = [#tpu.dimension_semantics<parallel>, #tpu.dimension_semantics<arbitrary>], iteration_bounds = array<i64: 1, 1>, scalar_prefetch = 0 : i64, scratch_operands = 0 : i64, tpu.core_type = #tpu.core_type<tc>, window_params = [{transform_indices = @transform_0, window_bounds = array<i64: 2, 4, 256>}, {transform_indices = @transform_1, window_bounds = array<i64: 1, 4, 1>}, {transform_indices = @transform_2, window_bounds = array<i64: 1, 4, 4>}]} {
    %c0_i32 = arith.constant 0 : i32
    %0 = arith.cmpi eq, %arg1, %c0_i32 : i32
    %1 = arith.extui %0 : i1 to i32
    %c0_i32_0 = arith.constant 0 : i32
    %2 = arith.cmpi ne, %1, %c0_i32_0 : i32
    scf.if %2 {
      %cst_22 = arith.constant 0.000000e+00 : f32
      %27 = vector.broadcast %cst_22 : f32 to vector<1x4x1xf32>
      %c0_23 = arith.constant 0 : index
      %c0_24 = arith.constant 0 : index
      %c0_25 = arith.constant 0 : index
      %28 = vector.load %arg3[%c0_23, %c0_24, %c0_25] : memref<1x4x1xf32, #tpu.memory_space<vmem>>, vector<1x4x1xf32>
      tpu.vector_store %arg3[%c0_23, %c0_24, %c0_25], %27 {strides = array<i32>} : memref<1x4x1xf32, #tpu.memory_space<vmem>>, vector<1x4x1xf32>,
      %cst_26 = arith.constant 0.000000e+00 : f32
      %29 = vector.broadcast %cst_26 : f32 to vector<1x4x4xf32>
      %c0_27 = arith.constant 0 : index
      %c0_28 = arith.constant 0 : index
      %c0_29 = arith.constant 0 : index
      %30 = vector.load %arg4[%c0_27, %c0_28, %c0_29] : memref<1x4x4xf32, #tpu.memory_space<vmem>>, vector<1x4x4xf32>
      tpu.vector_store %arg4[%c0_27, %c0_28, %c0_29], %29 {strides = array<i32>} : memref<1x4x4xf32, #tpu.memory_space<vmem>>, vector<1x4x4xf32>,
    } else {
    }
    %cst = arith.constant 0.000000e+00 : f32
    %3 = vector.broadcast %cst : f32 to vector<4x1xf32>
    %cst_1 = arith.constant 0.000000e+00 : f32
    %4 = vector.broadcast %cst_1 : f32 to vector<4x4xf32>
    %c0 = arith.constant 0 : index
    %c0_2 = arith.constant 0 : index
    %c0_3 = arith.constant 0 : index
    %5 = vector.load %arg2[%c0, %c0_2, %c0_3] : memref<2x4x256xf32, #tpu.memory_space<vmem>>, vector<1x4x256xf32>
    %6 = vector.shape_cast %5 : vector<1x4x256xf32> to vector<4x256xf32>
    %cst_4 = arith.constant dense<0.000000e+00> : vector<4xf32>
    %7 = vector.multi_reduction <add>, %6, %cst_4 [1] : vector<4x256xf32> to vector<4xf32>
    %8 = vector.shape_cast %7 : vector<4xf32> to vector<4x1xf32>
    %9 = arith.addf %3, %8 : vector<4x1xf32>
    %cst_5 = arith.constant dense<0.000000e+00> : vector<4x4xf32>
    %10 = tpu.matmul %6, %6, %cst_5 {dimension_numbers = #tpu.dot_dimension_numbers<[1], [1], [0], [0], [0, 0, 1, 0], [], []>} : vector<4x256xf32>, vector<4x256xf32>, vector<4x4xf32> -> vector<4x4xf32>
    %11 = arith.addf %4, %10 : vector<4x4xf32>
    %c1 = arith.constant 1 : index
    %c0_6 = arith.constant 0 : index
    %c0_7 = arith.constant 0 : index
    %12 = vector.load %arg2[%c1, %c0_6, %c0_7] : memref<2x4x256xf32, #tpu.memory_space<vmem>>, vector<1x4x256xf32>
    %13 = vector.shape_cast %12 : vector<1x4x256xf32> to vector<4x256xf32>
    %cst_8 = arith.constant dense<0.000000e+00> : vector<4xf32>
    %14 = vector.multi_reduction <add>, %13, %cst_8 [1] : vector<4x256xf32> to vector<4xf32>
    %15 = vector.shape_cast %14 : vector<4xf32> to vector<4x1xf32>
    %16 = arith.addf %9, %15 : vector<4x1xf32>
    %cst_9 = arith.constant dense<0.000000e+00> : vector<4x4xf32>
    %17 = tpu.matmul %13, %13, %cst_9 {dimension_numbers = #tpu.dot_dimension_numbers<[1], [1], [0], [0], [0, 0, 1, 0], [], []>} : vector<4x256xf32>, vector<4x256xf32>, vector<4x4xf32> -> vector<4x4xf32>
    %18 = arith.addf %11, %17 : vector<4x4xf32>
    %c0_10 = arith.constant 0 : index
    %c0_11 = arith.constant 0 : index
    %c0_12 = arith.constant 0 : index
    %19 = vector.load %arg3[%c0_10, %c0_11, %c0_12] : memref<1x4x1xf32, #tpu.memory_space<vmem>>, vector<1x4x1xf32>
    %20 = vector.shape_cast %16 : vector<4x1xf32> to vector<1x4x1xf32>
    %21 = arith.addf %19, %20 : vector<1x4x1xf32>
    %c0_13 = arith.constant 0 : index
    %c0_14 = arith.constant 0 : index
    %c0_15 = arith.constant 0 : index
    %22 = vector.load %arg3[%c0_13, %c0_14, %c0_15] : memref<1x4x1xf32, #tpu.memory_space<vmem>>, vector<1x4x1xf32>
    tpu.vector_store %arg3[%c0_13, %c0_14, %c0_15], %21 {strides = array<i32>} : memref<1x4x1xf32, #tpu.memory_space<vmem>>, vector<1x4x1xf32>,
    %c0_16 = arith.constant 0 : index
    %c0_17 = arith.constant 0 : index
    %c0_18 = arith.constant 0 : index
    %23 = vector.load %arg4[%c0_16, %c0_17, %c0_18] : memref<1x4x4xf32, #tpu.memory_space<vmem>>, vector<1x4x4xf32>
    %24 = vector.shape_cast %18 : vector<4x4xf32> to vector<1x4x4xf32>
    %25 = arith.addf %23, %24 : vector<1x4x4xf32>
    %c0_19 = arith.constant 0 : index
    %c0_20 = arith.constant 0 : index
    %c0_21 = arith.constant 0 : index
    %26 = vector.load %arg4[%c0_19, %c0_20, %c0_21] : memref<1x4x4xf32, #tpu.memory_space<vmem>>, vector<1x4x4xf32>
    tpu.vector_store %arg4[%c0_19, %c0_20, %c0_21], %25 {strides = array<i32>} : memref<1x4x4xf32, #tpu.memory_space<vmem>>, vector<1x4x4xf32>,
    return
  }
  func.func @transform_0(%arg0: i32, %arg1: i32) -> (i32, i32, i32) {
    %c0_i32 = arith.constant 0 : i32
    %c0_i32_0 = arith.constant 0 : i32
    return %arg0, %c0_i32, %arg1 : i32, i32, i32
  }
  func.func @transform_1(%arg0: i32, %arg1: i32) -> (i32, i32, i32) {
    %c0_i32 = arith.constant 0 : i32
    %c0_i32_0 = arith.constant 0 : i32
    %c0_i32_1 = arith.constant 0 : i32
    return %arg0, %c0_i32, %c0_i32_0 : i32, i32, i32
  }
  func.func @transform_2(%arg0: i32, %arg1: i32) -> (i32, i32, i32) {
    %c0_i32 = arith.constant 0 : i32
    %c0_i32_0 = arith.constant 0 : i32
    %c0_i32_1 = arith.constant 0 : i32
    return %arg0, %c0_i32, %c0_i32_0 : i32, i32, i32
  }
}

</mosaic_0001>

<bundles_post_ra>
// kernel: tpu_custom_call.1
= control target key start
LH: loop header
LB: loop body
LE: loop exit
PB: predicated region body
PF: predicated region fallthrough
CT: control target
= control target key end

     0   :  { %8 = vsyncpa [#allocation3], 0  ;;  %s332_s0 = inlined_call_operand.hbm [shape: f32[2,4,256], index: 0, kind: input, shape index: {}]   ;;  %s333_s1 = inlined_call_operand.vmem [shape: f32[1,4,1], index: 1, kind: output, shape index: {0}]   ;;  %s334_s2 = inlined_call_operand.hbm [shape: f32[1,4,4], index: 2, kind: output, shape index: {1}]  }
   0x1   :  { %9 = vsyncpa [#allocation4], 0  ;;  %s277_s9 = smov [#allocation2]   ;;  %s229_s13 = scalar_lea.hbm %s332_s0, 256 }
   0x2   :  { %s15_s10 = sshll.u32 %s277_s9, 4  ;;  %p230_p0 = scmp.ne.s32.totalorder %s332_s0, %s229_s13  ;;  %s16_s10 = int_to_ptr.vmem [resolvable:$true] %s15_s10 }
   0x3   :  { %p233_p1 = scmp.lt.u32.totalorder %s229_s13, %s332_s0 }
   0x5   :  { %p235_p2 = pnand %p233_p1, %p230_p0 }
   0x7   :  { %238 = shalt.err (!%p235_p2)
}
   0x8   :  { %s239_s18 = scalar_lea.vmem %s16_s10, 256  ;;  %p244_p4 = scmp.lt.s32.totalorder %s16_s10, %s16_s10 }
   0x9   :  { %p240_p3 = scmp.ne.s32.totalorder %s16_s10, %s239_s18  ;;  %p245_p5 = scmp.lt.s32.totalorder %s239_s18, %s239_s18 }
   0xb   :  { %p246_p6 = por %p245_p5, %p244_p4 }
   0xd   :  { %p247_p7 = pnand %p246_p6, %p240_p3 }
   0xf   :  { %250 = shalt.err (!%p247_p7)
}
  0x10   :  { %s278_s19 = smov 128   ;;  %s279_s20 = smov 8  }
  0x11   :  { %21 = dma.hbm_to_vmem [thread:$0]  %s332_s0, 256, %s16_s10, [#allocation3], %s278_s19, %s278_s19, %s279_s20  }
  0x12   :  { %273 = dma.done.wait [#allocation3], 256  }
  0x13   :  { %274 = vsyncadd [#allocation3], 4294967040  ;;  %vm31_vm0 = vcmask 27648   ;;  %v280_v0 = vmov 0.0   ;;  %vm37_vm1 = vcmask 1043456   ;;  %v45_v1 = vld [vmem:[#allocation2 + $0x8] sm:$0xff] }
  0x14   :  { %32 = vst.msk [vmem:[#allocation5] sm:$0xf] %vm31_vm0, %v280_v0  ;;  %v33_v2 = vld [vmem:[#allocation2] sm:$0xff]  ;;  %v47_v3 = vcombine.high %v45_v1, %v45_v1  ;;  %v49_v7 = vsel %vm37_vm1, %v45_v1, 0.0  ;;  %vm29_vm2 = vcmask 3072   ;;  %s281_s28 = smov [#allocation5]  }
  0x15   :  { %v35_v4 = vcombine.high %v33_v2, %v33_v2  ;;  %v38_v5 = vsel %vm37_vm1, %v33_v2, 0.0  ;;  %30 = vst.msk [vmem:[%s333_s1] sm:$0xf] %vm29_vm2, %v280_v0  ;;  %s211_s29 = sshll.u32 %s281_s28, 4  ;;  %s212_s29 = int_to_ptr.vmem [resolvable:$true] %s211_s29 }
  0x16   :  { %55 = vmatprep.subr.mxu0 %v47_v3  ;;  %v50_v8 = vsel %vm37_vm1, %v47_v3, 0.0  ;;  %119 = vmatprep.mubr.f32.mxu0 %v47_v3  ;;  %s251_s30 = scalar_lea.vmem %s212_s29, 64  ;;  %p256_p9 = scmp.lt.s32.totalorder %s212_s29, %s212_s29 }
  0x17   :  { %125 = vmatprep.subr.mxu1 %v35_v4  ;;  %v39_v6 = vsel %vm37_vm1, %v35_v4, 0.0  ;;  %56 = vmatpush1.xpose.msra.mxu0 %v45_v1  ;;  %v51_v10 = vadd.f32 %v50_v8, %v49_v7  ;;  %p252_p8 = scmp.ne.s32.totalorder %s212_s29, %s251_s30  ;;  %p257_p10 = scmp.lt.s32.totalorder %s251_s30, %s251_s30 }
  0x18   :  { %126 = vmatpush1.xpose.msra.mxu1 %v33_v2  ;;  %v40_v9 = vadd.f32 %v39_v6, %v38_v5  ;;  %189 = vmatprep.mubr.f32.mxu1 %v35_v4 }
  0x19   :  { %p258_p11 = por %p257_p10, %p256_p9 }
  0x1a   :  { %41 = vadd.xlane.f32.xlu0 %v40_v9  ;;  %120 = vmatmul.mubr.f32.vlgmr.msra.gmra.mrb[0].mxu0 %v45_v1 }
  0x1b   :  { %190 = vmatmul.mubr.f32.vlgmr.msra.gmra.mrb[0].mxu1 %v33_v2  ;;  %v199_v18 = vld [vmem:[#allocation5] sm:$0xf]  ;;  %p259_p12 = pnand %p258_p11, %p252_p8 }
  0x1c   :  { %v195_v13 = vld [vmem:[%s333_s1] sm:$0xf] }
  0x1e   :  { %52 = vadd.xlane.f32.xlu0 %v51_v10 }
  0xa7   :  { %v42_v11 = vpop.xlane.xlu0 %41 }
  0xab   :  { %v53_v12 = vpop.xlane.xlu0 %52 }
  0xac   :  { %v54_v14 = vadd.f32 %v53_v12, %v42_v11 }
  0xae   :  { %v196_v15 = vadd.f32 %v195_v13, %v54_v14 }
  0xb0   :  { %198 = vst.msk [vmem:[%s333_s1] sm:$0xf] %vm29_vm2, %v196_v15 }
  0xed   :  { %v121_v16 = vpop.f32.mrb[0].mxu0 }
  0xee   :  { %v191_v17 = vpop.f32.mrb[0].mxu1  ;;  %v123_v20 = vpop.f32.mrb[1].mxu0 }
  0xef   :  { %v192_v19 = vadd.f32 %v191_v17, %v121_v16  ;;  %v193_v21 = vpop.f32.mrb[1].mxu1 }
  0xf1   :  { %v200_v22 = vadd.f32 %v199_v18, %v192_v19 }
  0xf3   :  { %202 = vst.msk [vmem:[#allocation5] sm:$0xf] %vm31_vm0, %v200_v22 }
  0xf4   :  { %262 = shalt.err (!%p259_p12)
}
  0xf5   :  { %s263_s4 = scalar_lea.hbm %s334_s2, 64 }
  0xf6   :  { %p264_p13 = scmp.ne.s32.totalorder %s334_s2, %s263_s4  ;;  %p267_p0 = scmp.lt.u32.totalorder %s263_s4, %s334_s2 }
  0xf8   :  { %p269_p1 = pnand %p267_p0, %p264_p13 }
  0xfa   :  { %272 = shalt.err (!%p269_p1)
}
  0xfb   :  { %214 = dma.vmem_to_hbm [thread:$0]  %s212_s29, 64, %s334_s2, [#allocation4]  }
  0xfc   :  { %275 = dma.done.wait [#allocation4], 64  }
  0xfd   :  { %276 = vsyncadd [#allocation4], 4294967232 }
  0xfe   :  { %220 = vsyncpa [#allocation3], 1 }
  0xff   :  { %221 = vsyncpa [#allocation4], 1 }

</bundles_post_ra>
